<compile_context>
chip_gen: v6e
topology: v6e:2x2x1
jax: 0.10.0
libtpu: 0.0.40
codegen_flags: <defaults>
</compile_context>

<pallas_src>
import jax
import jax.numpy as jnp
from jax.experimental import pallas as pl
from jax.experimental.pallas import tpu as pltpu

_LANE = 128


def _add_kernel(x_ref, sc_ref, out_ref):
    # Elementwise hot path on the current VMEM slab.
    out_ref[...] = x_ref[...] + sc_ref[...]


def _min_sublane(dtype) -> int:
    """Minimum packed-sublane multiple for the dtype (8 f32, 16 bf16, 32 int8/fp8)."""
    return {4: 8, 2: 16, 1: 32}.get(jnp.dtype(dtype).itemsize, 8)


def _round_up(v: int, m: int) -> int:
    return ((v + m - 1) // m) * m


def _vmem_capacity_bytes() -> int:
    """Physical VMEM of the current chip; conservative (v7x per-TC) fallback."""
    try:
        return int(pltpu.get_tpu_info().vmem_capacity_bytes)
    except Exception:  # e.g. query unavailable in this environment
        return 64 << 20


def _pick_flat_width(total: int) -> int:
    """Largest convenient multiple of 128 dividing `total` (0 if none)."""
    for w in (4096, 2048, 1024, 512, 256, _LANE):
        if total % w == 0:
            return w
    return 0


def _choose_row_tile(rows: int, width: int, dtype, target_steps: int = 8) -> int:
    """Row-block size: as many bytes as the per-generation VMEM budget allows,
    a multiple of the packed-sublane minimum, but small enough that the grid
    still has ~target_steps steps (pipeline overlap + both v7x TCs get work)."""
    itemsize = jnp.dtype(dtype).itemsize
    row_bytes = width * itemsize
    min_rows = _min_sublane(dtype)

    cap = _vmem_capacity_bytes()
    if cap <= (64 << 20):            # v7x-class: 64 MiB physical per TensorCore
        working_budget = 40 << 20    # 6 buffers (x, sc, out x double-buffered)
    else:                            # v5e / v6e: 128 MiB
        working_budget = 90 << 20
    per_buffer = min(working_budget // 6, 16 << 20)

    tile = max(min_rows, (per_buffer // max(row_bytes, 1)) // min_rows * min_rows)
    # Keep at least ~target_steps grid steps so inbound DMA of step i+1 overlaps
    # the writeback of step i, and the "parallel" axis can be split across cores.
    step_rows = max(min_rows, _round_up(pl.cdiv(rows, target_steps), min_rows))
    return min(tile, step_rows)


def _elementwise_add(x: jax.Array, sc: jax.Array) -> jax.Array:
    assert x.shape == sc.shape and x.dtype == sc.dtype, "x / self_connection_temp mismatch"
    orig_shape = x.shape
    total = int(x.size)
    itemsize = jnp.dtype(x.dtype).itemsize

    # Pick a lane-dense 2-D view (last dim a multiple of 128) when possible.
    if x.ndim == 2 and x.shape[-1] % _LANE == 0:
        rows, width = int(x.shape[0]), int(x.shape[1])
        a, b = x, sc
    else:
        width = _pick_flat_width(total)
        if width:
            rows = total // width
        else:
            # Fallback: native (rows, feat) layout; last dim equals the full
            # array dim so the block is legal (stores become lane-masked).
            width = int(orig_shape[-1])
            rows = total // width
        a = x.reshape(rows, width)
        b = sc.reshape(rows, width)

    tile = _choose_row_tile(rows, width, x.dtype)
    if tile >= rows:
        tile = rows  # single full-array block: always a legal block shape
    grid = (pl.cdiv(rows, tile),)

    block_bytes = tile * width * itemsize
    cap = _vmem_capacity_bytes()
    limit_ceiling = (48 << 20) if cap <= (64 << 20) else (100 << 20)
    vmem_limit = int(max(16 << 20, min(6 * block_bytes + (8 << 20), limit_ceiling)))

    spec = pl.BlockSpec((tile, width), lambda i: (i, 0))

    out = pl.pallas_call(
        _add_kernel,
        out_shape=jax.ShapeDtypeStruct((rows, width), x.dtype),
        grid=grid,
        in_specs=[spec, spec],
        out_specs=spec,
        compiler_params=pltpu.CompilerParams(
            dimension_semantics=("parallel",),
            vmem_limit_bytes=vmem_limit,
        ),
        cost_estimate=pl.CostEstimate(
            flops=total,
            transcendentals=0,
            bytes_accessed=3 * total * itemsize,
        ),
    )(a, b)

    return out.reshape(orig_shape)


def self_connection_outro(data: dict, *, key_x: str = "x",
                          key_temp: str = "self_connection_temp") -> dict:
    """Pallas implementation of SelfConnectionOutro.forward:
    data[key_x] += data[key_temp]; del data[key_temp]."""
    x = data[key_x]
    sc = data[key_temp]
    data[key_x] = _elementwise_add(x, sc)
    del data[key_temp]
    return data


if __name__ == "__main__":
    key = jax.random.PRNGKey(0)

    # Case 1: small graph, feature dim NOT a multiple of 128 -> flattened
    # lane-dense (45, 128) view, ragged last block.
    k1, k2 = jax.random.split(key)
    n1, f1 = 30, 192
    x1 = jax.random.normal(k1, (n1, f1), dtype=jnp.float32)
    sc1 = jax.random.normal(k2, (n1, f1), dtype=jnp.float32)
    data1 = {"x": x1, "self_connection_temp": sc1}
    data1 = self_connection_outro(data1)
    out1 = jax.block_until_ready(data1["x"])
    assert out1.shape == (n1, f1)
    assert jnp.allclose(out1, x1 + sc1, atol=1e-6)
    assert "self_connection_temp" not in data1

    # Case 2: larger node count, 128-wide features -> multi-step row tiling
    # with a ragged last block (no padding pass).
    k3, k4 = jax.random.split(k2)
    n2, f2 = 1037, 128
    x2 = jax.random.normal(k3, (n2, f2), dtype=jnp.float32)
    sc2 = jax.random.normal(k4, (n2, f2), dtype=jnp.float32)
    data2 = {"x": x2, "self_connection_temp": sc2}
    data2 = self_connection_outro(data2)
    out2 = jax.block_until_ready(data2["x"])
    assert out2.shape == (n2, f2)
    assert jnp.allclose(out2, x2 + sc2, atol=1e-6)
    assert "self_connection_temp" not in data2

    # Case 3: tiny, awkward shape (total not a multiple of 128) -> native-layout
    # single full-array block fallback.
    k5, k6 = jax.random.split(k4)
    n3, f3 = 7, 65
    x3 = jax.random.normal(k5, (n3, f3), dtype=jnp.float32)
    sc3 = jax.random.normal(k6, (n3, f3), dtype=jnp.float32)
    data3 = {"x": x3, "self_connection_temp": sc3}
    data3 = self_connection_outro(data3)
    out3 = jax.block_until_ready(data3["x"])
    assert jnp.allclose(out3, x3 + sc3, atol=1e-6)
    assert "self_connection_temp" not in data3

    print("KERNEL_OK")
</pallas_src>

<mosaic_0001>
module attributes {stable_mosaic.version = 11 : i64} {
  func.func @_add_kernel(%arg0: i32, %arg1: memref<8x128xf32, #tpu.memory_space<vmem>>, %arg2: memref<8x128xf32, #tpu.memory_space<vmem>>, %arg3: memref<8x128xf32, #tpu.memory_space<vmem>>) attributes {dimension_semantics = [#tpu.dimension_semantics<parallel>], iteration_bounds = array<i64: 6>, scalar_prefetch = 0 : i64, scratch_operands = 0 : i64, tpu.core_type = #tpu.core_type<tc>, window_params = [{transform_indices = @transform_0, window_bounds = array<i64: 8, 128>}, {transform_indices = @transform_1, window_bounds = array<i64: 8, 128>}, {transform_indices = @transform_2, window_bounds = array<i64: 8, 128>}]} {
    %c0 = arith.constant 0 : index
    %c0_0 = arith.constant 0 : index
    %0 = vector.load %arg1[%c0, %c0_0] : memref<8x128xf32, #tpu.memory_space<vmem>>, vector<8x128xf32>
    %c0_1 = arith.constant 0 : index
    %c0_2 = arith.constant 0 : index
    %1 = vector.load %arg2[%c0_1, %c0_2] : memref<8x128xf32, #tpu.memory_space<vmem>>, vector<8x128xf32>
    %2 = arith.addf %0, %1 : vector<8x128xf32>
    %c0_3 = arith.constant 0 : index
    %c0_4 = arith.constant 0 : index
    %3 = vector.load %arg3[%c0_3, %c0_4] : memref<8x128xf32, #tpu.memory_space<vmem>>, vector<8x128xf32>
    tpu.vector_store %arg3[%c0_3, %c0_4], %2 {strides = array<i32>} : memref<8x128xf32, #tpu.memory_space<vmem>>, vector<8x128xf32>,
    return
  }
  func.func @transform_0(%arg0: i32) -> (i32, i32) {
    %c0_i32 = arith.constant 0 : i32
    %c0_i32_0 = arith.constant 0 : i32
    return %arg0, %c0_i32 : i32, i32
  }
  func.func @transform_1(%arg0: i32) -> (i32, i32) {
    %c0_i32 = arith.constant 0 : i32
    %c0_i32_0 = arith.constant 0 : i32
    return %arg0, %c0_i32 : i32, i32
  }
  func.func @transform_2(%arg0: i32) -> (i32, i32) {
    %c0_i32 = arith.constant 0 : i32
    %c0_i32_0 = arith.constant 0 : i32
    return %arg0, %c0_i32 : i32, i32
  }
}

</mosaic_0001>

<bundles_post_ra>
// kernel: tpu_custom_call.1
= control target key start
LH: loop header
LB: loop body
LE: loop exit
PB: predicated region body
PF: predicated region fallthrough
CT: control target
= control target key end

     0   :  { %7 = vsyncpa [#allocation3], 0  ;;  %s709_s0 = inlined_call_operand.hbm [shape: f32[45,128], index: 0, kind: input, shape index: {}]   ;;  %s710_s1 = inlined_call_operand.hbm [shape: f32[45,128], index: 1, kind: input, shape index: {}]   ;;  %s711_s2 = inlined_call_operand.hbm [shape: f32[45,128], index: 2, kind: output, shape index: {}]  }
   0x1   :  { %9 = vsyncpa [#allocation3 + $0x1], 0 }
   0x2   :  { %10 = vsyncpa [#allocation6], 0 }
   0x3   :  { %12 = vsyncpa [#allocation6 + $0x1], 0 }
   0x4   :  { %13 = vsyncpa [#allocation4], 0 }
   0x5   :  { %15 = vsyncpa [#allocation4 + $0x1], 0  ;;  %s517_s9 = smov 0   ;;  %s519_s10 = smov 0  }
   0x6   :  { %s521_s11 = smov 0   ;;  %s523_s12 = smov 0  }
   0x7 LB: > { %s538_s13 = sadd.s32 4294967295, %s497_s12   ;;  %s307_s14 = sadd.s32 4294967294, %s497_s12   ;;  %s497_s12 = sphi %s523_s12, %s729_s12   ;;  %s493_s11 = sphi %s521_s11, %s728_s11   ;;  %s489_s10 = sphi %s519_s10, %s727_s10   ;;  %s485_s9 = sphi %s517_s9, %s726_s9  }
   0x8   : > { %s542_s15 = sadd.s32 1, %s497_s12   ;;  %s28_s16 = sadd.s32 1, %s493_s11 }
   0x9   : > { %s25_s17 = ssub.s32 %s497_s12, %s542_s15  ;;  %p35_p0 = scmp.ne.s32.totalorder %s493_s11, %s489_s10 }
   0xa   : > { %p26_p1 = scmp.eq.s32.totalorder %s25_s17, 0  ;;  %p36_p2 = scmp.eq.s32.totalorder %s497_s12, 0 }
   0xb   : > { %p41_p3 = scmp.ne.s32.totalorder %s489_s10, %s485_s9  ;;  %p42_p4 = scmp.eq.s32.totalorder %s538_s13, 0 }
   0xc   : > { %s554_s18 = scalar_select %p26_p1, %s493_s11, %s28_s16  }
   0xd   : > { %p556_p5 = por %p36_p2, %p35_p0  ;;  %p560_p6 = por %p42_p4, %p41_p3 }
   0xe   : > { %p91_p7 = scmp.eq.s32.totalorder %s538_s13, 5  ;;  %p97_p8 = scmp.eq.s32.totalorder %s307_s14, 5 }
   0xf   : > { %s715_s20 = scalar_select %p560_p6, 1, 0 }
  0x10   : > { %p339_p9 = scmp.lt.s32.totalorder %s497_s12, 6  ;;  %p566_p10 = por %p91_p7, %p35_p0 }
  0x11   : > { %p570_p11 = por %p97_p8, %p41_p3  ;;  %s575_s23 = sand.u32 1, %s493_s11  }
  0x12   : > { %s716_s21 = scalar_select %p566_p10, 1, 0 }
  0x13   : > { %s717_s22 = scalar_select %p570_p11, 1, 0 }
  0x14   : > { %s311_s24 = sshll.u32 %s497_s12, 7  ;;  %s310_s25 = sshll.u32 %s575_s23, 3 }
  0x15   : > { %s584_s28 = scalar_lea.hbm %s709_s0, %s311_s24  ;;  %s121_s29 = scalar_lea.vmem [#allocation2], %s310_s25 }
  0x16   : > { %s128_s30 = sshll.u32 %s121_s29, 4  ;;  %p590_p12 = pnand %p339_p9, %p556_p5  ;;  %s594_s30 = int_to_ptr.vmem [resolvable:$true] %s128_s30 }
  0x17   : > { %s118_s4 = scalar_lea.sflag [#allocation3], %s575_s23  ;;  %s373_s5 = scalar_lea.hbm %s584_s28, 128 }
  0x18   : > { %p374_p1 = scmp.ne.s32.totalorder %s584_s28, %s373_s5  ;;  %p375_p2 = pneg %p590_p12 }
  0x19   : > { %s378_s8 = scalar_lea.hbm %s709_s0, 768  ;;  %p379_p5 = scmp.lt.s32.totalorder %s584_s28, %s709_s0 }
  0x1a   : > { %p376_p3 = pnand %p375_p2, %p374_p1  ;;  %p380_p7 = scmp.lt.s32.totalorder %s378_s8, %s373_s5 }
  0x1c   : > { %p377_p4 = pneg %p376_p3  ;;  %p381_p8 = por %p380_p7, %p379_p5 }
  0x1e   : > { %p382_p9 = pnand %p381_p8, %p377_p4 }
  0x20   : > { %385 = shalt.err (!%p382_p9)
}
  0x21   : > { %s386_s17 = scalar_lea.vmem %s594_s30, 128  ;;  %s499_s19 = smov [#allocation2]  }
  0x22   : > { %p387_p13 = scmp.ne.s32.totalorder %s594_s30, %s386_s17  ;;  %s391_s26 = sshll.u32 %s499_s19, 4  ;;  %s392_s26 = int_to_ptr.vmem [resolvable:$false] %s391_s26 }
  0x23   : > { %s393_s27 = scalar_lea.vmem %s392_s26, 256  ;;  %p394_p0 = scmp.lt.s32.totalorder %s594_s30, %s392_s26 }
  0x24   : > { %p389_p1 = pnand %p387_p13, %p375_p2  ;;  %p395_p11 = scmp.lt.s32.totalorder %s393_s27, %s386_s17 }
  0x26   : > { %p390_p3 = pneg %p389_p1  ;;  %p396_p10 = por %p395_p11, %p394_p0 }
  0x28   : > { %p397_p5 = pnand %p396_p10, %p390_p3 }
  0x2a   : > { %400 = shalt.err (!%p397_p5)
}
  0x2b   : > { %331 = dma.hbm_to_vmem [thread:$0]  (!%p590_p12), %s584_s28, 128, %s594_s30, %s118_s4  }
  0x2c   : > { %p719_p13 = scmp.lt.s32.totalorder %s497_s12, 7  ;;  %p720_p4 = scmp.ge.s32.totalorder %s497_s12, 1 }
  0x2d   : > { %s636_s7 = scalar_lea.hbm %s710_s1, %s311_s24  ;;  %s139_s8 = scalar_lea.vmem [#allocation5], %s310_s25 }
  0x2e   : > { %p627_p7 = pnand %p720_p4, %p719_p13  ;;  %s146_s14 = sshll.u32 %s139_s8, 4  ;;  %s147_s14 = int_to_ptr.vmem [resolvable:$true] %s146_s14 }
  0x2f   : > { %s136_s28 = scalar_lea.sflag [#allocation6], %s575_s23  ;;  %s401_s30 = scalar_lea.hbm %s636_s7, 128 }
  0x30   : > { %s721_s29 = scalar_select %p627_p7, 1, 0 }
  0x31   : > { %p402_p10 = scmp.ne.s32.totalorder %s636_s7, %s401_s30  ;;  %s406_s17 = scalar_lea.hbm %s710_s1, 768 }
  0x32   : > { %p407_p8 = scmp.lt.s32.totalorder %s636_s7, %s710_s1  ;;  %p408_p9 = scmp.lt.s32.totalorder %s406_s17, %s401_s30 }
  0x33   : > { %p404_p11 = pnand %p402_p10, %p375_p2 }
  0x34   : > { %p409_p1 = por %p408_p9, %p407_p8 }
  0x35   : > { %p405_p0 = pneg %p404_p11 }
  0x37   : > { %p410_p3 = pnand %p409_p1, %p405_p0 }
  0x39   : > { %413 = shalt.err (!%p410_p3)
}
  0x3a   : > { %s414_s25 = scalar_lea.vmem %s147_s14, 128  ;;  %s500_s23 = smov [#allocation5]  }
  0x3b   : > { %p415_p5 = scmp.ne.s32.totalorder %s147_s14, %s414_s25  ;;  %s419_s26 = sshll.u32 %s500_s23, 4  ;;  %s420_s26 = int_to_ptr.vmem [resolvable:$false] %s419_s26 }
  0x3c   : > { %s421_s27 = scalar_lea.vmem %s420_s26, 256  ;;  %p422_p10 = scmp.lt.s32.totalorder %s147_s14, %s420_s26 }
  0x3d   : > { %p417_p13 = pnand %p415_p5, %p375_p2  ;;  %p423_p11 = scmp.lt.s32.totalorder %s421_s27, %s414_s25 }
  0x3f   : > { %p418_p4 = pneg %p417_p13  ;;  %p424_p6 = por %p423_p11, %p422_p10 }
  0x41   : > { %p425_p7 = pnand %p424_p6, %p418_p4 }
  0x43   : > { %428 = shalt.err (!%p425_p7)
}
  0x44   : > { %334 = dma.hbm_to_vmem [thread:$0]  (!%p590_p12), %s636_s7, 128, %s147_s14, %s136_s28  }
  0x45   : > { %p722_p0 = scmp.ne.s32.totalorder %s721_s29, 0 }
  0x46   : > { %s662_s5 = sand.u32 (!%p722_p0), 1, %s489_s10   ;;  %p723_p2 = scmp.ne.s32.totalorder (!%p722_p0), %s715_s20, 0 }
  0x47   : > { %155 = sbr.rel (%p722_p0) target bundleno = 104 (0x68), region = 28  ;;  %s315_s6 = sshll.u32 (!%p722_p0), %s662_s5, 3 }
  0x48   : > { %s158_s8 = scalar_lea.sflag (!%p722_p0), [#allocation3], %s662_s5  ;;  %s161_s30 = scalar_lea.vmem (!%p722_p0), [#allocation2], %s315_s6 }
  0x4c   : > { %472 = dma.done.wait (%p723_p2), %s158_s8, 128  }
  0x4d   : > { %474 = vsyncadd (%p723_p2), %s158_s8, 4294967168  ;;  %s167_s3 = scalar_lea.sflag [#allocation6], %s662_s5  ;;  %s170_s7 = scalar_lea.vmem [#allocation5], %s315_s6 }
  0x4e   : > { %476 = dma.done.wait (%p723_p2), %s167_s3, 128  }
  0x4f   : > { %478 = vsyncadd (%p723_p2), %s167_s3, 4294967168  ;;  %s195_s29 = scalar_lea.vmem [#allocation7], %s315_s6  ;;  %s319_s28 = sshll.u32 %s538_s13, 7  ;;  %v196_v0 = vld [vmem:[%s161_s30] sm:$0xff]  ;;  %v197_v1 = vld [vmem:[%s170_s7] sm:$0xff] }
  0x50   : > { %s214_s14 = sshll.u32 %s195_s29, 4  ;;  %v198_v2 = vadd.f32 %v197_v1, %v196_v0  ;;  %s212_s17 = scalar_lea.hbm %s711_s2, %s319_s28  ;;  %s215_s14 = int_to_ptr.vmem [resolvable:$true] %s214_s14 }
  0x51   : > { %s201_s24 = scalar_lea.sflag [#allocation4], %s662_s5  ;;  %s429_s19 = scalar_lea.vmem %s215_s14, 128 }
  0x52   : > { %199 = vst [vmem:[%s195_s29] sm:$0xff] %v198_v2  ;;  %p430_p6 = scmp.ne.s32.totalorder %s215_s14, %s429_s19  ;;  %p724_p12 = scmp.ne.s32.totalorder %s716_s21, 0 }
  0x53   : > { %s501_s20 = smov [#allocation7]  }
  0x54   : > { %p431_p7 = pnand %p430_p6, %p724_p12  ;;  %s433_s25 = sshll.u32 %s501_s20, 4  ;;  %s434_s25 = int_to_ptr.vmem [resolvable:$false] %s433_s25 }
  0x55   : > { %s435_s23 = scalar_lea.vmem %s434_s25, 256  ;;  %p436_p9 = scmp.lt.s32.totalorder %s215_s14, %s434_s25 }
  0x56   : > { %p432_p8 = pneg %p431_p7  ;;  %p437_p1 = scmp.lt.s32.totalorder %s435_s23, %s429_s19 }
  0x58   : > { %p438_p3 = por %p437_p1, %p436_p9 }
  0x5a   : > { %p439_p5 = pnand %p438_p3, %p432_p8 }
  0x5c   : > { %442 = shalt.err (!%p439_p5)
}
  0x5d   : > { %s443_s13 = scalar_lea.hbm %s212_s17, 128  ;;  %s447_s5 = scalar_lea.hbm %s711_s2, 768 }
  0x5e   : > { %p444_p13 = scmp.ne.s32.totalorder %s212_s17, %s443_s13  ;;  %p448_p11 = scmp.lt.s32.totalorder %s212_s17, %s711_s2 }
  0x5f   : > { %p449_p0 = scmp.lt.s32.totalorder %s447_s5, %s443_s13 }
  0x60   : > { %p445_p4 = pnand %p444_p13, %p724_p12 }
  0x61   : > { %p450_p2 = por %p449_p0, %p448_p11 }
  0x62   : > { %p446_p10 = pneg %p445_p4 }
  0x64   : > { %p451_p6 = pnand %p450_p2, %p446_p10 }
  0x66   : > { %454 = shalt.err (!%p451_p6)
}
  0x67   : > { %326 = dma.vmem_to_hbm [thread:$0]  (%p724_p12), %s215_s14, 128, %s212_s17, %s201_s24  }
  0x68 PF: > { %p340_p7 = scmp.ge.s32.totalorder %s497_s12, 2  ;;  %s226_s30 = sand.u32 1, %s485_s9  }
  0x69   : > { %p725_p8 = scmp.ne.s32.totalorder %s717_s22, 0  ;;  %s227_s3 = scalar_lea.sflag [#allocation4], %s226_s30 }
  0x6b   : > { %p336_p9 = pnand %p340_p7, %p725_p8 }
  0x6d   : > { %p337_p1 = pneg %p336_p9 }
  0x6f   : > { %480 = dma.done.wait (%p337_p1), %s227_s3, 128  }
  0x70   : > { %482 = vsyncadd (%p337_p1), %s227_s3, 4294967168  ;;  %p18_p3 = scmp.ge.s32.totalorder %s542_s15, 8   ;;  %s726_s9 = smov %s489_s10 }
  0x71   : > { %s727_s10 = smov %s493_s11  ;;  %s728_s11 = smov %s554_s18 }
  0x72   : > { %s729_s12 = smov %s542_s15  ;;  %20 = sbr.rel (!%p18_p3) target bundleno = 7 (0x7), region = 86 }
  0x77   :  { %232 = vsyncpa [#allocation3], 1 }
  0x78   :  { %234 = vsyncpa [#allocation3 + $0x1], 1 }
  0x79   :  { %235 = vsyncpa [#allocation6], 1 }
  0x7a   :  { %237 = vsyncpa [#allocation6 + $0x1], 1 }
  0x7b   :  { %238 = vsyncpa [#allocation4], 1 }
  0x7c   :  { %240 = vsyncpa [#allocation4 + $0x1], 1 }

</bundles_post_ra>
